<compile_context>
chip_gen: v6e
topology: v6e:2x2x1
jax: 0.10.0
libtpu: 0.0.40
codegen_flags: <defaults>
</compile_context>

<pallas_src>
import functools

import jax
import jax.numpy as jnp
from jax.experimental import pallas as pl
from jax.experimental.pallas import tpu as pltpu


def _fused_low_layer_kernel(x_ref, w_ref, b_ref, out_ref, *, dim, layer_num):
    D = dim
    x = x_ref[...]                     # (bt, 4D): [user | tail | item(v) | head(e)]
    w = w_ref[...]                     # (4D, NCOLS): fused MLP + cross-compress weight
    b = b_ref[...]                     # (1, 4D):  [bu | bt | bv | be]
    b_ut = b[:, : 2 * D]
    b_v = b[:, 2 * D: 3 * D]
    b_e = b[:, 3 * D:]

    # layer_num is a static Python int -> unrolled; activations never leave
    # vregs/VMEM between layers.
    for _ in range(layer_num):
        v = x[:, 2 * D: 3 * D]
        e = x[:, 3 * D:]

        # One MXU matmul computes both fused MLP pre-activations (cols 0..2D-1)
        # and the four cross-compress row scalars (cols 2D..2D+3).
        y = jnp.dot(x, w, preferred_element_type=jnp.float32)     # (bt, NCOLS)

        ut = jnp.maximum(y[:, : 2 * D] + b_ut, 0.0)               # relu(Linear)
        s = y[:, 2 * D: 2 * D + 4]                                # s_vv,s_ev,s_ve,s_ee
        v_new = v * s[:, 0:1] + e * s[:, 1:2] + b_v   # v*(e.w_vv)+e*(v.w_ev)+bias_v
        e_new = v * s[:, 2:3] + e * s[:, 3:4] + b_e   # v*(e.w_ve)+e*(v.w_ee)+bias_e

        x = jnp.concatenate([ut, v_new, e_new], axis=-1)

    out_ref[...] = x.astype(out_ref.dtype)


def _pack_params(params, dim):
    """Pack all module parameters into one (4D, NCOLS) weight + one (1, 4D) bias slab."""
    D = dim
    ncols = pl.cdiv(2 * D + 4, 128) * 128          # lane-dense column count (128 for D=32)
    w = jnp.zeros((4 * D, ncols), jnp.float32)
    # Fused user/tail MLP (block-diagonal): slab rows 0..2D-1 -> cols 0..2D-1.
    w = w.at[:D, :D].set(params["wu_t"])
    w = w.at[D:2 * D, D:2 * D].set(params["wt_t"])
    # CrossCompress reduction columns (rows 2D..3D multiply v, rows 3D..4D multiply e).
    w = w.at[3 * D:, 2 * D + 0].set(params["wvv"][0])   # s_vv = e . w_vv
    w = w.at[2 * D:3 * D, 2 * D + 1].set(params["wev"][0])   # s_ev = v . w_ev
    w = w.at[3 * D:, 2 * D + 2].set(params["wve"][0])   # s_ve = e . w_ve
    w = w.at[2 * D:3 * D, 2 * D + 3].set(params["wee"][0])   # s_ee = v . w_ee
    # All biases in one (1, 4D) slab: [bu | bt | bv | be].
    b = jnp.concatenate(
        [params["bu"], params["bt"], params["bv"], params["be"]], axis=-1)
    return w, b


@functools.partial(jax.jit, static_argnames=("layer_num", "batch_tile"))
def low_layer_forward(user, item, head, tail, params, layer_num, batch_tile=1024):
    B, D = user.shape
    # Lane-dense activation slab: [user | tail | item | head] -> (B, 4D).
    x = jnp.concatenate([user, tail, item, head], axis=-1)
    w, b = _pack_params(params, D)
    ncols = w.shape[1]

    # Batch tiling (gridded, parallel). For the tiny demo B this is one block.
    if B <= batch_tile:
        bt = B
    else:
        bt = max(8, (batch_tile // 8) * 8)
    Bp = pl.cdiv(B, bt) * bt
    if Bp != B:
        x = jnp.pad(x, ((0, Bp - B), (0, 0)))

    out = pl.pallas_call(
        functools.partial(_fused_low_layer_kernel, dim=D, layer_num=layer_num),
        out_shape=jax.ShapeDtypeStruct((Bp, 4 * D), jnp.float32),
        grid_spec=pltpu.PrefetchScalarGridSpec(
            num_scalar_prefetch=0,
            grid=(Bp // bt,),
            in_specs=[
                pl.BlockSpec((bt, 4 * D), lambda i: (i, 0)),    # activation slab
                pl.BlockSpec((4 * D, ncols), lambda i: (0, 0)), # packed weight
                pl.BlockSpec((1, 4 * D), lambda i: (0, 0)),     # packed biases
            ],
            out_specs=pl.BlockSpec((bt, 4 * D), lambda i: (i, 0)),
        ),
        compiler_params=pltpu.CompilerParams(
            dimension_semantics=("parallel",)),
    )(x, w, b)

    out = out[:B]
    user_o = out[:, :D]
    tail_o = out[:, D: 2 * D]
    item_o = out[:, 2 * D: 3 * D]
    # head is not returned by the PyTorch module's forward.
    return user_o, item_o, tail_o


def init_params(key, dim):
    ks = jax.random.split(key, 8)
    scale = 1.0 / jnp.sqrt(dim)
    # PyTorch Linear weight is (out, in); kernel consumes the (in, out) transpose.
    wu = jax.random.uniform(ks[0], (dim, dim), jnp.float32, -scale, scale)
    wt = jax.random.uniform(ks[1], (dim, dim), jnp.float32, -scale, scale)
    return {
        "wu_t": wu.T,
        "bu": jax.random.uniform(ks[2], (1, dim), jnp.float32, -scale, scale),
        "wt_t": wt.T,
        "bt": jax.random.uniform(ks[3], (1, dim), jnp.float32, -scale, scale),
        "wvv": jax.random.uniform(ks[4], (1, dim), jnp.float32, -scale, scale),
        "wve": jax.random.uniform(ks[5], (1, dim), jnp.float32, -scale, scale),
        "wev": jax.random.uniform(ks[6], (1, dim), jnp.float32, -scale, scale),
        "wee": jax.random.uniform(ks[7], (1, dim), jnp.float32, -scale, scale),
        "bv": jnp.zeros((1, dim), jnp.float32),   # nn.Parameter(torch.zeros(dim))
        "be": jnp.zeros((1, dim), jnp.float32),
    }


def reference_forward(user, item, head, tail, params, layer_num):
    """Pure-JAX reference mirroring the PyTorch graph (explicit bmm path)."""
    B, D = user.shape
    hp = jax.lax.Precision.HIGHEST
    for _ in range(layer_num):
        user = jax.nn.relu(jnp.dot(user, params["wu_t"], precision=hp) + params["bu"])
        tail = jax.nn.relu(jnp.dot(tail, params["wt_t"], precision=hp) + params["bt"])
        v, e = item, head
        c = v[:, :, None] * e[:, None, :]                 # (B, D, D)
        c_t = jnp.transpose(c, (0, 2, 1))
        c_flat = c.reshape(-1, D)
        ct_flat = c_t.reshape(-1, D)
        v_out = (jnp.dot(c_flat, params["wvv"].T, precision=hp)
                 + jnp.dot(ct_flat, params["wev"].T, precision=hp)).reshape(B, D) + params["bv"]
        e_out = (jnp.dot(c_flat, params["wve"].T, precision=hp)
                 + jnp.dot(ct_flat, params["wee"].T, precision=hp)).reshape(B, D) + params["be"]
        item, head = v_out, e_out
    return user, item, tail


if __name__ == "__main__":
    B, DIM, LAYER_NUM = 8, 32, 2

    key = jax.random.PRNGKey(0)
    k_u, k_i, k_h, k_t, k_p = jax.random.split(key, 5)
    user = jax.random.normal(k_u, (B, DIM), jnp.float32)
    item = jax.random.normal(k_i, (B, DIM), jnp.float32)
    head = jax.random.normal(k_h, (B, DIM), jnp.float32)
    tail = jax.random.normal(k_t, (B, DIM), jnp.float32)
    params = init_params(k_p, DIM)

    out_user, out_item, out_tail = low_layer_forward(
        user, item, head, tail, params, layer_num=LAYER_NUM)
    jax.block_until_ready((out_user, out_item, out_tail))

    ref_user, ref_item, ref_tail = reference_forward(
        user, item, head, tail, params, LAYER_NUM)
    assert jnp.allclose(out_user, ref_user, atol=1e-3, rtol=1e-3)
    assert jnp.allclose(out_item, ref_item, atol=1e-3, rtol=1e-3)
    assert jnp.allclose(out_tail, ref_tail, atol=1e-3, rtol=1e-3)

    print("KERNEL_OK")
</pallas_src>

<mosaic_0001>
module attributes {stable_mosaic.version = 11 : i64} {
  func.func @_fused_low_layer_kernel(%arg0: i32, %arg1: memref<8x128xf32, #tpu.memory_space<vmem>>, %arg2: memref<128x128xf32, #tpu.memory_space<vmem>>, %arg3: memref<1x128xf32, #tpu.memory_space<vmem>>, %arg4: memref<8x128xf32, #tpu.memory_space<vmem>>) attributes {dimension_semantics = [#tpu.dimension_semantics<parallel>], iteration_bounds = array<i64: 1>, scalar_prefetch = 0 : i64, scratch_operands = 0 : i64, tpu.core_type = #tpu.core_type<tc>, window_params = [{transform_indices = @transform_0, window_bounds = array<i64: 8, 128>}, {pipeline_mode = #tpu.pipeline_mode<synchronous>, transform_indices = @transform_1, window_bounds = array<i64: 128, 128>}, {pipeline_mode = #tpu.pipeline_mode<synchronous>, transform_indices = @transform_2, window_bounds = array<i64: 1, 128>}, {transform_indices = @transform_3, window_bounds = array<i64: 8, 128>}]} {
    %c0 = arith.constant 0 : index
    %c0_0 = arith.constant 0 : index
    %0 = vector.load %arg1[%c0, %c0_0] : memref<8x128xf32, #tpu.memory_space<vmem>>, vector<8x128xf32>
    %c0_1 = arith.constant 0 : index
    %c0_2 = arith.constant 0 : index
    %1 = vector.load %arg2[%c0_1, %c0_2] : memref<128x128xf32, #tpu.memory_space<vmem>>, vector<128x128xf32>
    %c0_3 = arith.constant 0 : index
    %c0_4 = arith.constant 0 : index
    %2 = vector.load %arg3[%c0_3, %c0_4] : memref<1x128xf32, #tpu.memory_space<vmem>>, vector<1x128xf32>
    %3 = vector.extract_strided_slice %2 {offsets = [0, 0], sizes = [1, 64], strides = [1, 1]} : vector<1x128xf32> to vector<1x64xf32>
    %4 = vector.extract_strided_slice %2 {offsets = [0, 64], sizes = [1, 32], strides = [1, 1]} : vector<1x128xf32> to vector<1x32xf32>
    %5 = vector.extract_strided_slice %2 {offsets = [0, 96], sizes = [1, 32], strides = [1, 1]} : vector<1x128xf32> to vector<1x32xf32>
    %6 = vector.extract_strided_slice %0 {offsets = [0, 64], sizes = [8, 32], strides = [1, 1]} : vector<8x128xf32> to vector<8x32xf32>
    %7 = vector.extract_strided_slice %0 {offsets = [0, 96], sizes = [8, 32], strides = [1, 1]} : vector<8x128xf32> to vector<8x32xf32>
    %cst = arith.constant dense<0.000000e+00> : vector<8x128xf32>
    %8 = tpu.matmul %0, %1, %cst {dimension_numbers = #tpu.dot_dimension_numbers<[1], [0], [0], [1], [0, 0, 1, 1], [], []>} : vector<8x128xf32>, vector<128x128xf32>, vector<8x128xf32> -> vector<8x128xf32>
    %9 = vector.extract_strided_slice %8 {offsets = [0, 0], sizes = [8, 64], strides = [1, 1]} : vector<8x128xf32> to vector<8x64xf32>
    %10 = vector.broadcast %3 : vector<1x64xf32> to vector<8x64xf32>
    %11 = arith.addf %9, %10 : vector<8x64xf32>
    %cst_5 = arith.constant 0.000000e+00 : f32
    %12 = vector.broadcast %cst_5 : f32 to vector<8x64xf32>
    %13 = arith.maximumf %11, %12 : vector<8x64xf32>
    %14 = vector.extract_strided_slice %8 {offsets = [0, 64], sizes = [8, 4], strides = [1, 1]} : vector<8x128xf32> to vector<8x4xf32>
    %15 = vector.extract_strided_slice %14 {offsets = [0, 0], sizes = [8, 1], strides = [1, 1]} : vector<8x4xf32> to vector<8x1xf32>
    %16 = vector.broadcast %15 : vector<8x1xf32> to vector<8x32xf32>
    %17 = arith.mulf %6, %16 : vector<8x32xf32>
    %18 = vector.extract_strided_slice %14 {offsets = [0, 1], sizes = [8, 1], strides = [1, 1]} : vector<8x4xf32> to vector<8x1xf32>
    %19 = vector.broadcast %18 : vector<8x1xf32> to vector<8x32xf32>
    %20 = arith.mulf %7, %19 : vector<8x32xf32>
    %21 = arith.addf %17, %20 : vector<8x32xf32>
    %22 = vector.broadcast %4 : vector<1x32xf32> to vector<8x32xf32>
    %23 = arith.addf %21, %22 : vector<8x32xf32>
    %24 = vector.extract_strided_slice %14 {offsets = [0, 2], sizes = [8, 1], strides = [1, 1]} : vector<8x4xf32> to vector<8x1xf32>
    %25 = vector.broadcast %24 : vector<8x1xf32> to vector<8x32xf32>
    %26 = arith.mulf %6, %25 : vector<8x32xf32>
    %27 = vector.extract_strided_slice %14 {offsets = [0, 3], sizes = [8, 1], strides = [1, 1]} : vector<8x4xf32> to vector<8x1xf32>
    %28 = vector.broadcast %27 : vector<8x1xf32> to vector<8x32xf32>
    %29 = arith.mulf %7, %28 : vector<8x32xf32>
    %30 = arith.addf %26, %29 : vector<8x32xf32>
    %31 = vector.broadcast %5 : vector<1x32xf32> to vector<8x32xf32>
    %32 = arith.addf %30, %31 : vector<8x32xf32>
    %33 = tpu.concatenate %13, %23, %32 in 1 : vector<8x64xf32>, vector<8x32xf32>, vector<8x32xf32> -> vector<8x128xf32>
    %34 = vector.extract_strided_slice %33 {offsets = [0, 64], sizes = [8, 32], strides = [1, 1]} : vector<8x128xf32> to vector<8x32xf32>
    %35 = vector.extract_strided_slice %33 {offsets = [0, 96], sizes = [8, 32], strides = [1, 1]} : vector<8x128xf32> to vector<8x32xf32>
    %cst_6 = arith.constant dense<0.000000e+00> : vector<8x128xf32>
    %36 = tpu.matmul %33, %1, %cst_6 {dimension_numbers = #tpu.dot_dimension_numbers<[1], [0], [0], [1], [0, 0, 1, 1], [], []>} : vector<8x128xf32>, vector<128x128xf32>, vector<8x128xf32> -> vector<8x128xf32>
    %37 = vector.extract_strided_slice %36 {offsets = [0, 0], sizes = [8, 64], strides = [1, 1]} : vector<8x128xf32> to vector<8x64xf32>
    %38 = vector.broadcast %3 : vector<1x64xf32> to vector<8x64xf32>
    %39 = arith.addf %37, %38 : vector<8x64xf32>
    %cst_7 = arith.constant 0.000000e+00 : f32
    %40 = vector.broadcast %cst_7 : f32 to vector<8x64xf32>
    %41 = arith.maximumf %39, %40 : vector<8x64xf32>
    %42 = vector.extract_strided_slice %36 {offsets = [0, 64], sizes = [8, 4], strides = [1, 1]} : vector<8x128xf32> to vector<8x4xf32>
    %43 = vector.extract_strided_slice %42 {offsets = [0, 0], sizes = [8, 1], strides = [1, 1]} : vector<8x4xf32> to vector<8x1xf32>
    %44 = vector.broadcast %43 : vector<8x1xf32> to vector<8x32xf32>
    %45 = arith.mulf %34, %44 : vector<8x32xf32>
    %46 = vector.extract_strided_slice %42 {offsets = [0, 1], sizes = [8, 1], strides = [1, 1]} : vector<8x4xf32> to vector<8x1xf32>
    %47 = vector.broadcast %46 : vector<8x1xf32> to vector<8x32xf32>
    %48 = arith.mulf %35, %47 : vector<8x32xf32>
    %49 = arith.addf %45, %48 : vector<8x32xf32>
    %50 = vector.broadcast %4 : vector<1x32xf32> to vector<8x32xf32>
    %51 = arith.addf %49, %50 : vector<8x32xf32>
    %52 = vector.extract_strided_slice %42 {offsets = [0, 2], sizes = [8, 1], strides = [1, 1]} : vector<8x4xf32> to vector<8x1xf32>
    %53 = vector.broadcast %52 : vector<8x1xf32> to vector<8x32xf32>
    %54 = arith.mulf %34, %53 : vector<8x32xf32>
    %55 = vector.extract_strided_slice %42 {offsets = [0, 3], sizes = [8, 1], strides = [1, 1]} : vector<8x4xf32> to vector<8x1xf32>
    %56 = vector.broadcast %55 : vector<8x1xf32> to vector<8x32xf32>
    %57 = arith.mulf %35, %56 : vector<8x32xf32>
    %58 = arith.addf %54, %57 : vector<8x32xf32>
    %59 = vector.broadcast %5 : vector<1x32xf32> to vector<8x32xf32>
    %60 = arith.addf %58, %59 : vector<8x32xf32>
    %61 = tpu.concatenate %41, %51, %60 in 1 : vector<8x64xf32>, vector<8x32xf32>, vector<8x32xf32> -> vector<8x128xf32>
    %c0_8 = arith.constant 0 : index
    %c0_9 = arith.constant 0 : index
    %62 = vector.load %arg4[%c0_8, %c0_9] : memref<8x128xf32, #tpu.memory_space<vmem>>, vector<8x128xf32>
    tpu.vector_store %arg4[%c0_8, %c0_9], %61 {strides = array<i32>} : memref<8x128xf32, #tpu.memory_space<vmem>>, vector<8x128xf32>,
    return
  }
  func.func @transform_0(%arg0: i32) -> (i32, i32) {
    %c0_i32 = arith.constant 0 : i32
    %c0_i32_0 = arith.constant 0 : i32
    return %arg0, %c0_i32 : i32, i32
  }
  func.func @transform_1(%arg0: i32) -> (i32, i32) {
    %c0_i32 = arith.constant 0 : i32
    %c0_i32_0 = arith.constant 0 : i32
    %c0_i32_1 = arith.constant 0 : i32
    return %c0_i32, %c0_i32_0 : i32, i32
  }
  func.func @transform_2(%arg0: i32) -> (i32, i32) {
    %c0_i32 = arith.constant 0 : i32
    %c0_i32_0 = arith.constant 0 : i32
    %c0_i32_1 = arith.constant 0 : i32
    return %c0_i32, %c0_i32_0 : i32, i32
  }
  func.func @transform_3(%arg0: i32) -> (i32, i32) {
    %c0_i32 = arith.constant 0 : i32
    %c0_i32_0 = arith.constant 0 : i32
    return %arg0, %c0_i32 : i32, i32
  }
}

</mosaic_0001>

<bundles_post_ra>
// kernel: low_layer_forward.1
= control target key start
LH: loop header
LB: loop body
LE: loop exit
PB: predicated region body
PF: predicated region fallthrough
CT: control target
= control target key end

     0   :  { %v391_v0 = vmov 0.0   ;;  %vm392_vm0 = vmmov 0   ;;  %v393_v3 = vmov 67   ;;  %v394_v5 = vmov 66   ;;  %s398_s20 = smov 32   ;;  %s527_s1 = inlined_call_operand.vmem [shape: f32[128,128], index: 1, kind: input, shape index: {}]   ;;  %s528_s0 = inlined_call_operand.vmem [shape: f32[8,128], index: 0, kind: input, shape index: {}]   ;;  %s529_s2 = inlined_call_operand.vmem [shape: f32[1,128], index: 2, kind: input, shape index: {}]   ;;  %s530_s3 = inlined_call_operand.vmem [shape: f32[8,128], index: 3, kind: output, shape index: {}]  }
   0x1   :  { %305 = vmatprep.subr.mxu0 %v391_v0  ;;  %v30_v1 = vld [vmem:[%s527_s1 + $0x78] sm:$0xff]  ;;  %v29_v2 = vld [vmem:[%s527_s1 + $0x70] sm:$0xff]  ;;  %337 = vmatprep.mubr.msk.f32.mxu0 %vm392_vm0, %v391_v0  ;;  %v28_v4 = vld [vmem:[%s527_s1 + $0x68] sm:$0xff]  ;;  %v395_v22 = vmov 65   ;;  %v396_v23 = vmov 64   ;;  %vm150_vm1 = vcmask 523264  }
   0x2   :  { %306 = vmatpush3.msra.mxu0 %v30_v1  ;;  %383 = vset.pattern.permute.xlu0 %v393_v3  ;;  %v27_v6 = vld [vmem:[%s527_s1 + $0x60] sm:$0xff]  ;;  %v26_v7 = vld [vmem:[%s527_s1 + $0x58] sm:$0xff]  ;;  %v25_v8 = vld [vmem:[%s527_s1 + $0x50] sm:$0xff]  ;;  %vm152_vm2 = vcmask 785408  }
   0x3   :  { %307 = vmatprep.subr.mxu0 %v391_v0  ;;  %385 = vset.pattern.permute.xlu1 %v394_v5  ;;  %v24_v9 = vld [vmem:[%s527_s1 + $0x48] sm:$0xff]  ;;  %v23_v10 = vld [vmem:[%s527_s1 + $0x40] sm:$0xff]  ;;  %v22_v11 = vld [vmem:[%s527_s1 + $0x38] sm:$0xff] }
   0x4   :  { %308 = vmatpush3.msra.mxu0 %v29_v2  ;;  %340 = vmatprep.subr.mxu1 %v391_v0  ;;  %v21_v12 = vld [vmem:[%s527_s1 + $0x30] sm:$0xff]  ;;  %v20_v13 = vld [vmem:[%s527_s1 + $0x28] sm:$0xff]  ;;  %v19_v14 = vld [vmem:[%s527_s1 + $0x20] sm:$0xff] }
   0x5   :  { %309 = vmatprep.subr.mxu0 %v391_v0  ;;  %341 = vmatpush3.msra.mxu1 %v30_v1  ;;  %v18_v15 = vld [vmem:[%s527_s1 + $0x18] sm:$0xff]  ;;  %v17_v16 = vld [vmem:[%s527_s1 + $0x10] sm:$0xff]  ;;  %v16_v17 = vld [vmem:[%s527_s1 + $0x8] sm:$0xff] }
   0x6   :  { %310 = vmatpush3.msra.mxu0 %v28_v4  ;;  %342 = vmatprep.subr.mxu1 %v391_v0  ;;  %v15_v18 = vld [vmem:[%s527_s1] sm:$0xff] }
   0x7   :  { %311 = vmatprep.subr.mxu0 %v391_v0  ;;  %343 = vmatpush3.msra.mxu1 %v29_v2  ;;  %v14_v19 = vld [vmem:[%s528_s0] sm:$0xff]  ;;  %s397_s0 = smov 96  }
   0x8   :  { %312 = vmatpush3.msra.mxu0 %v27_v6  ;;  %344 = vmatprep.subr.mxu1 %v391_v0  ;;  %v270_v27 = vld [vmem:[%s529_s2] ss:$0 sm:$0xff] }
   0x9   :  { %313 = vmatprep.subr.mxu0 %v391_v0  ;;  %345 = vmatpush3.msra.mxu1 %v28_v4 }
   0xa   :  { %314 = vmatpush3.msra.mxu0 %v26_v7  ;;  %346 = vmatprep.subr.mxu1 %v391_v0 }
   0xb   :  { %315 = vmatprep.subr.mxu0 %v391_v0  ;;  %347 = vmatpush3.msra.mxu1 %v27_v6 }
   0xc   :  { %316 = vmatpush3.msra.mxu0 %v25_v8  ;;  %348 = vmatprep.subr.mxu1 %v391_v0 }
   0xd   :  { %317 = vmatprep.subr.mxu0 %v391_v0  ;;  %349 = vmatpush3.msra.mxu1 %v26_v7 }
   0xe   :  { %318 = vmatpush3.msra.mxu0 %v24_v9  ;;  %350 = vmatprep.subr.mxu1 %v391_v0 }
   0xf   :  { %319 = vmatprep.subr.mxu0 %v391_v0  ;;  %351 = vmatpush3.msra.mxu1 %v25_v8 }
  0x10   :  { %320 = vmatpush3.msra.mxu0 %v23_v10  ;;  %352 = vmatprep.subr.mxu1 %v391_v0 }
  0x11   :  { %321 = vmatprep.subr.mxu0 %v391_v0  ;;  %353 = vmatpush3.msra.mxu1 %v24_v9 }
  0x12   :  { %322 = vmatpush3.msra.mxu0 %v22_v11  ;;  %354 = vmatprep.subr.mxu1 %v391_v0 }
  0x13   :  { %323 = vmatprep.subr.mxu0 %v391_v0  ;;  %355 = vmatpush3.msra.mxu1 %v23_v10 }
  0x14   :  { %324 = vmatpush3.msra.mxu0 %v21_v12  ;;  %356 = vmatprep.subr.mxu1 %v391_v0 }
  0x15   :  { %325 = vmatprep.subr.mxu0 %v391_v0  ;;  %357 = vmatpush3.msra.mxu1 %v22_v11 }
  0x16   :  { %326 = vmatpush3.msra.mxu0 %v20_v13  ;;  %358 = vmatprep.subr.mxu1 %v391_v0 }
  0x17   :  { %327 = vmatprep.subr.mxu0 %v391_v0  ;;  %359 = vmatpush3.msra.mxu1 %v21_v12 }
  0x18   :  { %328 = vmatpush3.msra.mxu0 %v19_v14  ;;  %360 = vmatprep.subr.mxu1 %v391_v0 }
  0x19   :  { %329 = vmatprep.subr.mxu0 %v391_v0  ;;  %361 = vmatpush3.msra.mxu1 %v20_v13 }
  0x1a   :  { %330 = vmatpush3.msra.mxu0 %v18_v15  ;;  %362 = vmatprep.subr.mxu1 %v391_v0 }
  0x1b   :  { %331 = vmatprep.subr.mxu0 %v391_v0  ;;  %363 = vmatpush3.msra.mxu1 %v19_v14 }
  0x1c   :  { %332 = vmatpush3.msra.mxu0 %v17_v16  ;;  %364 = vmatprep.subr.mxu1 %v391_v0 }
  0x1d   :  { %333 = vmatprep.subr.mxu0 %v391_v0  ;;  %365 = vmatpush3.msra.mxu1 %v18_v15 }
  0x1e   :  { %334 = vmatpush3.msra.mxu0 %v16_v17  ;;  %366 = vmatprep.subr.mxu1 %v391_v0 }
  0x1f   :  { %335 = vmatprep.subr.mxu0 %v391_v0  ;;  %367 = vmatpush3.msra.mxu1 %v17_v16 }
  0x20   :  { %336 = vmatpush3.msra.mxu0 %v15_v18  ;;  %368 = vmatprep.subr.mxu1 %v391_v0 }
  0x21   :  { %338 = vmatmul.mubr.f32.vlgmr.msra.gmra.mxu0 %v14_v19  ;;  %369 = vmatpush3.msra.mxu1 %v16_v17 }
  0x22   :  { %370 = vmatprep.subr.mxu1 %v391_v0  ;;  %372 = vmatprep.mubr.msk.f32.mxu1 %vm392_vm0, %v391_v0 }
  0x23   :  { %371 = vmatpush3.msra.mxu1 %v15_v18 }
  0xe1   :  { %v98_v20 = vpop.f32.mrf.mxu0 }
  0xe2   :  { %128 = vperm.xlu1 %385, %v98_v20   ;;  %133 = vperm.xlu0 %383, %v98_v20   ;;  %v108_v39 = vadd.f32 %v270_v27, %v98_v20 }
  0xe3   :  { %v339_v21 = vpop.f32.mrf.mxu0 }
  0xe4   :  { %v109_v41 = vmax.f32 %v108_v39, 0.0 }
  0xe6   :  { %384 = vset.pattern.permute.xlu0 %v395_v22  ;;  %388 = vset.pattern.permute.xlu1 %v395_v22 }
  0xe7   :  { %117 = vperm.xlu0 %384, %v98_v20  }
  0xeb   :  { %386 = vset.pattern.permute.xlu0 %v396_v23 }
  0xec   :  { %112 = vperm.xlu0 %386, %v98_v20  }
  0xf0   :  { %387 = vset.pattern.permute.xlu0 %v393_v3 }
 0x15d   :  { %v134_v24 = vpop.permute.xlu0 %133  ;;  %v129_v29 = vpop.permute.xlu1 %128 }
 0x15e   :  { %v136_v25 = vmul.f32 %v134_v24, %v14_v19  ;;  %v131_v31 = vmul.f32 %v129_v29, %v14_v19 }
 0x160   :  { %138 = vrot.lane.b32.xlu1 %v136_v25, %s397_s0 }
 0x162   :  { %v118_v26 = vpop.permute.xlu0 %117 }
 0x163   :  { %v120_v28 = vmul.f32 %v118_v26, %v14_v19 }
 0x164   :  { %142 = vrot.lane.b32.xlu1 %v270_v27, %s397_s0 }
 0x167   :  { %v113_v35 = vpop.permute.xlu0 %112 }
 0x168   :  { %122 = vrot.lane.b32.xlu1 %v120_v28, %s397_s0  ;;  %v115_v37 = vmul.f32 %v113_v35, %v14_v19 }
 0x1d2   :  { %v139_v30 = vpop.permute.xlu1 %138 }
 0x1d3   :  { %v141_v32 = vadd.f32 %v139_v30, %v131_v31 }
 0x1d6   :  { %v143_v33 = vpop.permute.xlu1 %142 }
 0x1d7   :  { %v145_v34 = vadd.f32 %v143_v33, %v141_v32 }
 0x1d9   :  { %147 = vrot.lane.b32.xlu1 %v145_v34, %s398_s20 }
 0x1da   :  { %v123_v36 = vpop.permute.xlu1 %122 }
 0x1db   :  { %v125_v38 = vadd.f32 %v123_v36, %v115_v37 }
 0x1dd   :  { %v126_v40 = vadd.f32 %v270_v27, %v125_v38 }
 0x1df   :  { %v151_v43 = vsel %vm150_vm1, %v109_v41, %v126_v40 }
 0x24b   :  { %v148_v42 = vpop.permute.xlu1 %147 }
 0x24c   :  { %v153_v44 = vsel %vm152_vm2, %v151_v43, %v148_v42 }
 0x24d   :  { %373 = vmatmul.mubr.f32.vlgmr.msra.gmra.mxu1 %v153_v44 }
 0x30d   :  { %v220_v45 = vpop.f32.mrf.mxu1 }
 0x30e   :  { %233 = vperm.xlu1 %388, %v220_v45   ;;  %249 = vperm.xlu0 %387, %v220_v45   ;;  %v224_v60 = vadd.f32 %v270_v27, %v220_v45 }
 0x30f   :  { %v374_v46 = vpop.f32.mrf.mxu1 }
 0x310   :  { %v225_v62 = vmax.f32 %v224_v60, 0.0 }
 0x312   :  { %389 = vset.pattern.permute.xlu1 %v394_v5 }
 0x313   :  { %244 = vperm.xlu1 %389, %v220_v45  }
 0x317   :  { %390 = vset.pattern.permute.xlu1 %v396_v23 }
 0x318   :  { %228 = vperm.xlu1 %390, %v220_v45  }
 0x389   :  { %v250_v47 = vpop.permute.xlu0 %249  ;;  %v234_v49 = vpop.permute.xlu1 %233 }
 0x38a   :  { %v252_v48 = vmul.f32 %v250_v47, %v153_v44  ;;  %v236_v50 = vmul.f32 %v234_v49, %v153_v44 }
 0x38c   :  { %254 = vrot.lane.b32.xlu0 %v252_v48, %s397_s0 }
 0x38e   :  { %v245_v51 = vpop.permute.xlu1 %244 }
 0x38f   :  { %v247_v52 = vmul.f32 %v245_v51, %v153_v44 }
 0x390   :  { %238 = vrot.lane.b32.xlu0 %v236_v50, %s397_s0 }
 0x393   :  { %v229_v56 = vpop.permute.xlu1 %228 }
 0x394   :  { %v231_v58 = vmul.f32 %v229_v56, %v153_v44 }
 0x3fe   :  { %v255_v53 = vpop.permute.xlu0 %254 }
 0x3ff   :  { %v257_v54 = vadd.f32 %v255_v53, %v247_v52 }
 0x401   :  { %v258_v55 = vadd.f32 %v257_v54, %v143_v33 }
 0x402   :  { %v239_v57 = vpop.permute.xlu0 %238 }
 0x403   :  { %260 = vrot.lane.b32.xlu1 %v258_v55, %s398_s20  ;;  %v241_v59 = vadd.f32 %v239_v57, %v231_v58 }
 0x405   :  { %v242_v61 = vadd.f32 %v270_v27, %v241_v59 }
 0x407   :  { %v263_v0 = vsel %vm150_vm1, %v225_v62, %v242_v61 }
 0x475   :  { %v261_v63 = vpop.permute.xlu1 %260 }
 0x476   :  { %v264_v1 = vsel %vm152_vm2, %v263_v0, %v261_v63 }
 0x477   :  { %265 = vst [vmem:[%s530_s3] sm:$0xff] %v264_v1 }

</bundles_post_ra>
